<compile_context>
chip_gen: v7x
topology: tpu7x:2x2x1
jax: 0.10.0
libtpu: 0.0.40
codegen_flags: <defaults>
</compile_context>

<pallas_src>
import functools

import jax
import jax.numpy as jnp
from jax import lax
from jax.experimental import pallas as pl
from jax.experimental.pallas import tpu as pltpu


def _round_up(n, m):
    return ((n + m - 1) // m) * m


def _cdiv(a, b):
    return -(-a // b)


def _mlp_kernel(n_layers, n_chunks, chunk, act_dtype, *refs):
    """refs = [x_ref, w1, b1, ..., wn, bn, o_ref].

      x_ref : (TB, 8)            batch-major input tile (compute dtype)
      wi    : (out, in)          hidden-layer weights, PyTorch layout
      bi    : (out, 1)           hidden-layer biases, f32
      w_n   : (in, 1)            last-layer weight, pre-transposed, f32
      b_n   : (1, 1)             last-layer bias, f32
      o_ref : (n_chunks, chunk)  lane-dense output tile, f32
    """
    x_ref = refs[0]
    o_ref = refs[-1]
    wb = refs[1:-1]

    # Hoist all (tiny) parameter loads out of the chunk loop.
    w_first = wb[0][...]                                      # (d0, 8)
    b_first = wb[1][...]                                      # (d0, 1) f32
    hidden = [(wb[2 * li][...], wb[2 * li + 1][...])
              for li in range(1, n_layers - 1)]
    w_last = wb[2 * (n_layers - 1)][...]                      # (d_last, 1) f32
    b_last = wb[2 * (n_layers - 1) + 1][...]                  # (1, 1) f32

    def chunk_body(c, carry):
        off = pl.multiple_of(c * chunk, chunk)
        xc = x_ref[pl.ds(off, chunk), :]                      # (chunk, 8)
        # Layer 1: NT matmul (contract minor dim of both operands) ->
        # feature-major (d0, chunk); batch lands on the 128-lane axis.
        z = lax.dot_general(w_first, xc, (((1,), (1,)), ((), ())),
                            preferred_element_type=jnp.float32)
        h = jnp.maximum(z + b_first, 0.0).astype(act_dtype)   # bias + ReLU
        for w, b in hidden:
            z = jnp.dot(w, h.astype(w.dtype),
                        preferred_element_type=jnp.float32)   # MXU, f32 acc
            h = jnp.maximum(z + b, 0.0).astype(act_dtype)
        # Final (d_last -> 1) layer: a 1-column MXU matmul would waste a full
        # push/pop, so use a VPU multiply + cross-sublane (XLU) reduction.
        z = jnp.sum(w_last * h.astype(jnp.float32), axis=0,
                    keepdims=True) + b_last                   # (1, chunk) f32
        # Sigmoid: exp and approx reciprocal both run on the EUP slot.
        o_ref[pl.ds(c, 1), :] = pl.reciprocal(1.0 + jnp.exp(-z), approx=True)
        return carry

    if n_chunks == 1:
        chunk_body(0, 0)
    elif n_chunks <= 8:
        lax.fori_loop(0, n_chunks, chunk_body, 0, unroll=True)
    else:
        lax.fori_loop(0, n_chunks, chunk_body, 0)


def mlp_forward(x, weights, biases, *, tb=16384, chunk=256,
                compute_dtype=jnp.bfloat16, act_dtype=jnp.float32):
    """Forward pass of NeuralNetBinary.

    x       : (batch, 8), same layout as the PyTorch module input.
    weights : list of PyTorch-layout Linear weights, weights[i] shape (out, in).
    biases  : list of (out,) biases.
    compute_dtype : dtype of the x stream / hidden weights (MXU inputs).
    act_dtype     : dtype carried between layers; keep f32 on v5e (no bf16
                    VPU/EUP), bf16 is fine on v6e/v7x.
    """
    n_layers = len(weights)
    batch, in_dim = x.shape

    # ---- tile / chunk sizing -------------------------------------------------
    # chunk: in-kernel compute sub-chunk (lanes). 128-512 keeps per-chunk
    # intermediates well under the 64-vreg file (no spills) for these widths.
    chunk = max(128, _round_up(min(chunk, _round_up(batch, 128)), 128))
    # Pad only to a chunk multiple (bounds padding waste), then derive tb.
    padded_min = _round_up(batch, chunk)
    tb = max(chunk, _round_up(min(tb, padded_min), chunk))
    num_tiles = _cdiv(padded_min, tb)
    # Expose >=2 tiles when there is enough work so the "parallel" grid axis
    # can shard across both v7x TensorCores (no-op on v5e/v6e).
    if num_tiles == 1 and padded_min >= 2 * chunk:
        num_tiles = 2
    tb = _round_up(_cdiv(padded_min, num_tiles), chunk)
    padded = tb * num_tiles
    n_chunks = tb // chunk

    # ---- inputs ----------------------------------------------------------------
    # No wrapper transpose; the (optional) pad + cast fuse into one cheap op.
    x_p = x.astype(compute_dtype)
    if padded != batch:
        x_p = jnp.pad(x_p, ((0, padded - batch), (0, 0)))

    flat_params = []
    for li, (w, b) in enumerate(zip(weights, biases)):
        if li < n_layers - 1:
            flat_params.append(jnp.asarray(w, compute_dtype))            # (out, in)
        else:
            flat_params.append(jnp.asarray(w, jnp.float32).T)            # (in, 1)
        flat_params.append(jnp.asarray(b, jnp.float32).reshape(-1, 1))   # (out, 1)

    # x tile is pipelined HBM<->VMEM; the tiny weights/biases stay VMEM-resident
    # across all grid steps (full-array blocks, constant index_maps).
    in_specs = [pl.BlockSpec((tb, in_dim), lambda i: (i, 0))]
    for p in flat_params:
        in_specs.append(pl.BlockSpec(p.shape, lambda i: (0, 0)))

    out_specs = pl.BlockSpec((None, n_chunks, chunk), lambda i: (i, 0, 0))

    kernel = functools.partial(_mlp_kernel, n_layers, n_chunks, chunk, act_dtype)
    out = pl.pallas_call(
        kernel,
        out_shape=jax.ShapeDtypeStruct((num_tiles, n_chunks, chunk), jnp.float32),
        grid=(num_tiles,),
        in_specs=in_specs,
        out_specs=out_specs,
        compiler_params=pltpu.CompilerParams(
            dimension_semantics=("parallel",),   # tiles shard across TCs (v7x)
            vmem_limit_bytes=32 * 1024 * 1024,   # safe on v5e/v6e/v7x
        ),
    )(x_p, *flat_params)

    return out.reshape(padded)[:batch].reshape(batch, 1)


def init_params(key, dimensions, in_features=8):
    """Deterministic init matching NeuralNetBinary(dimensions) shapes.

    PyTorch Linear(in, out): weight (out, in), bias (out,), U(-1/sqrt(in), 1/sqrt(in)).
    """
    dims = [in_features] + list(dimensions) + [1]
    weights, biases = [], []
    for i in range(len(dims) - 1):
        fan_in, fan_out = dims[i], dims[i + 1]
        key, kw, kb = jax.random.split(key, 3)
        bound = 1.0 / jnp.sqrt(fan_in)
        w = jax.random.uniform(kw, (fan_out, fan_in), jnp.float32, -bound, bound)
        b = jax.random.uniform(kb, (fan_out,), jnp.float32, -bound, bound)
        weights.append(w)
        biases.append(b)
    return weights, biases


def reference_forward(x, weights, biases):
    h = x
    n = len(weights)
    for i, (w, b) in enumerate(zip(weights, biases)):
        z = h @ w.T + b
        h = jnp.maximum(z, 0.0) if i < n - 1 else jax.nn.sigmoid(z)
    return h


if __name__ == "__main__":
    key = jax.random.PRNGKey(0)
    dimensions = [32, 16]          # hidden sizes, as in NeuralNetBinary([32, 16])

    key, kx = jax.random.split(key)
    batch = 8
    x = jax.random.normal(kx, (batch, 8), jnp.float32)
    weights, biases = init_params(key, dimensions)
    ref = reference_forward(x, weights, biases)

    # Small batch: single tile, single chunk, full-precision streams.
    out = jax.block_until_ready(
        mlp_forward(x, weights, biases, compute_dtype=jnp.float32))
    assert out.shape == (batch, 1)
    assert jnp.allclose(out, ref, atol=2e-3, rtol=2e-3), "f32 mismatch vs reference"

    # Larger batch: 2 grid tiles (feeds both v7x TCs), multi-chunk inner loop,
    # batch padding (1000 -> 1024).
    key, kx2 = jax.random.split(key)
    batch2 = 1000
    x2 = jax.random.normal(kx2, (batch2, 8), jnp.float32)
    ref2 = reference_forward(x2, weights, biases)

    out2 = jax.block_until_ready(
        mlp_forward(x2, weights, biases, tb=1024, chunk=128,
                    compute_dtype=jnp.float32))
    assert out2.shape == (batch2, 1)
    assert jnp.allclose(out2, ref2, atol=2e-3, rtol=2e-3), "grid f32 mismatch"

    # Default config: bf16 x / hidden-weight streams (halves HBM traffic) with
    # f32 MXU accumulation and f32 elementwise tail (v5e-safe).
    out3 = jax.block_until_ready(mlp_forward(x2, weights, biases))
    assert out3.shape == (batch2, 1)
    assert jnp.allclose(out3, ref2, atol=5e-2, rtol=5e-2), "bf16 mismatch"

    # v6e/v7x-oriented config: bf16 inter-layer activations as well.
    out4 = jax.block_until_ready(
        mlp_forward(x2, weights, biases, act_dtype=jnp.bfloat16))
    assert out4.shape == (batch2, 1)
    assert jnp.allclose(out4, ref2, atol=5e-2, rtol=5e-2), "bf16-act mismatch"

    print("KERNEL_OK")
</pallas_src>

<mosaic_0001>
module attributes {stable_mosaic.version = 11 : i64} {
  func.func @_mlp_kernel(%arg0: i32, %arg1: memref<128x8xf32, #tpu.memory_space<vmem>>, %arg2: memref<32x8xf32, #tpu.memory_space<vmem>>, %arg3: memref<32x1xf32, #tpu.memory_space<vmem>>, %arg4: memref<16x32xf32, #tpu.memory_space<vmem>>, %arg5: memref<16x1xf32, #tpu.memory_space<vmem>>, %arg6: memref<16x1xf32, #tpu.memory_space<vmem>>, %arg7: memref<1x1xf32, #tpu.memory_space<vmem>>, %arg8: memref<1x1x128xf32, #tpu.memory_space<vmem>>) attributes {dimension_semantics = [#tpu.dimension_semantics<parallel>], iteration_bounds = array<i64: 1>, scalar_prefetch = 0 : i64, scratch_operands = 0 : i64, tpu.core_type = #tpu.core_type<tc>, window_params = [{transform_indices = @transform_0, window_bounds = array<i64: 128, 8>}, {pipeline_mode = #tpu.pipeline_mode<synchronous>, transform_indices = @transform_1, window_bounds = array<i64: 32, 8>}, {pipeline_mode = #tpu.pipeline_mode<synchronous>, transform_indices = @transform_2, window_bounds = array<i64: 32, 1>}, {pipeline_mode = #tpu.pipeline_mode<synchronous>, transform_indices = @transform_3, window_bounds = array<i64: 16, 32>}, {pipeline_mode = #tpu.pipeline_mode<synchronous>, transform_indices = @transform_4, window_bounds = array<i64: 16, 1>}, {pipeline_mode = #tpu.pipeline_mode<synchronous>, transform_indices = @transform_5, window_bounds = array<i64: 16, 1>}, {pipeline_mode = #tpu.pipeline_mode<synchronous>, transform_indices = @transform_6, window_bounds = array<i64: 1, 1>}, {transform_indices = @transform_7, window_bounds = array<i64: 1, 1, 128>}]} {
    %c0 = arith.constant 0 : index
    %c0_0 = arith.constant 0 : index
    %0 = vector.load %arg2[%c0, %c0_0] : memref<32x8xf32, #tpu.memory_space<vmem>>, vector<32x8xf32>
    %c0_1 = arith.constant 0 : index
    %c0_2 = arith.constant 0 : index
    %1 = vector.load %arg3[%c0_1, %c0_2] : memref<32x1xf32, #tpu.memory_space<vmem>>, vector<32x1xf32>
    %c0_3 = arith.constant 0 : index
    %c0_4 = arith.constant 0 : index
    %2 = vector.load %arg4[%c0_3, %c0_4] : memref<16x32xf32, #tpu.memory_space<vmem>>, vector<16x32xf32>
    %c0_5 = arith.constant 0 : index
    %c0_6 = arith.constant 0 : index
    %3 = vector.load %arg5[%c0_5, %c0_6] : memref<16x1xf32, #tpu.memory_space<vmem>>, vector<16x1xf32>
    %c0_7 = arith.constant 0 : index
    %c0_8 = arith.constant 0 : index
    %4 = vector.load %arg6[%c0_7, %c0_8] : memref<16x1xf32, #tpu.memory_space<vmem>>, vector<16x1xf32>
    %c0_9 = arith.constant 0 : index
    %c0_10 = arith.constant 0 : index
    %5 = vector.load %arg7[%c0_9, %c0_10] : memref<1x1xf32, #tpu.memory_space<vmem>>, vector<1x1xf32>
    %c0_i32 = arith.constant 0 : i32
    %6 = tpu.assume_multiple %c0_i32, 128 : i32
    %7 = arith.index_cast %6 : i32 to index
    %c0_11 = arith.constant 0 : index
    %8 = vector.load %arg1[%7, %c0_11] : memref<128x8xf32, #tpu.memory_space<vmem>>, vector<128x8xf32>
    %cst = arith.constant dense<0.000000e+00> : vector<32x128xf32>
    %9 = tpu.matmul %0, %8, %cst {dimension_numbers = #tpu.dot_dimension_numbers<[1], [1], [0], [0], [0, 0, 1, 0], [], []>} : vector<32x8xf32>, vector<128x8xf32>, vector<32x128xf32> -> vector<32x128xf32>
    %10 = vector.broadcast %1 : vector<32x1xf32> to vector<32x128xf32>
    %11 = arith.addf %9, %10 : vector<32x128xf32>
    %cst_12 = arith.constant 0.000000e+00 : f32
    %12 = vector.broadcast %cst_12 : f32 to vector<32x128xf32>
    %13 = arith.maximumf %11, %12 : vector<32x128xf32>
    %cst_13 = arith.constant dense<0.000000e+00> : vector<16x128xf32>
    %14 = tpu.matmul %2, %13, %cst_13 {dimension_numbers = #tpu.dot_dimension_numbers<[1], [0], [0], [1], [0, 0, 1, 1], [], []>} : vector<16x32xf32>, vector<32x128xf32>, vector<16x128xf32> -> vector<16x128xf32>
    %15 = vector.broadcast %3 : vector<16x1xf32> to vector<16x128xf32>
    %16 = arith.addf %14, %15 : vector<16x128xf32>
    %cst_14 = arith.constant 0.000000e+00 : f32
    %17 = vector.broadcast %cst_14 : f32 to vector<16x128xf32>
    %18 = arith.maximumf %16, %17 : vector<16x128xf32>
    %19 = vector.broadcast %4 : vector<16x1xf32> to vector<16x128xf32>
    %20 = arith.mulf %19, %18 : vector<16x128xf32>
    %cst_15 = arith.constant dense<0.000000e+00> : vector<128xf32>
    %21 = vector.multi_reduction <add>, %20, %cst_15 [0] : vector<16x128xf32> to vector<128xf32>
    %22 = vector.shape_cast %21 : vector<128xf32> to vector<1x128xf32>
    %23 = vector.broadcast %5 : vector<1x1xf32> to vector<1x128xf32>
    %24 = arith.addf %22, %23 : vector<1x128xf32>
    %cst_16 = arith.constant 0.000000e+00 : f32
    %25 = vector.broadcast %cst_16 : f32 to vector<1x128xf32>
    %26 = arith.subf %25, %24 : vector<1x128xf32>
    %27 = math.exp %26 : vector<1x128xf32>
    %cst_17 = arith.constant 1.000000e+00 : f32
    %28 = vector.broadcast %cst_17 : f32 to vector<1x128xf32>
    %29 = arith.addf %28, %27 : vector<1x128xf32>
    %30 = tpu.reciprocal %29 {approx = true} : vector<1x128xf32> -> vector<1x128xf32>
    %c0_18 = arith.constant 0 : index
    %c0_19 = arith.constant 0 : index
    %c0_20 = arith.constant 0 : index
    %31 = vector.load %arg8[%c0_18, %c0_19, %c0_20] : memref<1x1x128xf32, #tpu.memory_space<vmem>>, vector<1x1x128xf32>
    %32 = vector.shape_cast %31 : vector<1x1x128xf32> to vector<1x128xf32>
    %33 = vector.shape_cast %30 : vector<1x128xf32> to vector<1x1x128xf32>
    tpu.vector_store %arg8[%c0_18, %c0_19, %c0_20], %33 {strides = array<i32>} : memref<1x1x128xf32, #tpu.memory_space<vmem>>, vector<1x1x128xf32>,
    return
  }
  func.func @transform_0(%arg0: i32) -> (i32, i32) {
    %c0_i32 = arith.constant 0 : i32
    %c0_i32_0 = arith.constant 0 : i32
    return %arg0, %c0_i32 : i32, i32
  }
  func.func @transform_1(%arg0: i32) -> (i32, i32) {
    %c0_i32 = arith.constant 0 : i32
    %c0_i32_0 = arith.constant 0 : i32
    %c0_i32_1 = arith.constant 0 : i32
    return %c0_i32, %c0_i32_0 : i32, i32
  }
  func.func @transform_2(%arg0: i32) -> (i32, i32) {
    %c0_i32 = arith.constant 0 : i32
    %c0_i32_0 = arith.constant 0 : i32
    %c0_i32_1 = arith.constant 0 : i32
    return %c0_i32, %c0_i32_0 : i32, i32
  }
  func.func @transform_3(%arg0: i32) -> (i32, i32) {
    %c0_i32 = arith.constant 0 : i32
    %c0_i32_0 = arith.constant 0 : i32
    %c0_i32_1 = arith.constant 0 : i32
    return %c0_i32, %c0_i32_0 : i32, i32
  }
  func.func @transform_4(%arg0: i32) -> (i32, i32) {
    %c0_i32 = arith.constant 0 : i32
    %c0_i32_0 = arith.constant 0 : i32
    %c0_i32_1 = arith.constant 0 : i32
    return %c0_i32, %c0_i32_0 : i32, i32
  }
  func.func @transform_5(%arg0: i32) -> (i32, i32) {
    %c0_i32 = arith.constant 0 : i32
    %c0_i32_0 = arith.constant 0 : i32
    %c0_i32_1 = arith.constant 0 : i32
    return %c0_i32, %c0_i32_0 : i32, i32
  }
  func.func @transform_6(%arg0: i32) -> (i32, i32) {
    %c0_i32 = arith.constant 0 : i32
    %c0_i32_0 = arith.constant 0 : i32
    %c0_i32_1 = arith.constant 0 : i32
    return %c0_i32, %c0_i32_0 : i32, i32
  }
  func.func @transform_7(%arg0: i32) -> (i32, i32, i32) {
    %c0_i32 = arith.constant 0 : i32
    %c0_i32_0 = arith.constant 0 : i32
    %c0_i32_1 = arith.constant 0 : i32
    return %arg0, %c0_i32, %c0_i32_0 : i32, i32, i32
  }
}

</mosaic_0001>

<bundles_post_ra>
// kernel: tpu_custom_call.1
= control target key start
LH: loop header
LB: loop body
LE: loop exit
PB: predicated region body
PF: predicated region fallthrough
CT: control target
= control target key end

     0   :  { %s749_s0 = inlined_call_operand.vmem [shape: f32[128,8], index: 0, kind: input, shape index: {}]   ;;  %s750_s1 = inlined_call_operand.vmem [shape: f32[32,8], index: 1, kind: input, shape index: {}]   ;;  %s751_s2 = inlined_call_operand.vmem [shape: f32[32,1], index: 2, kind: input, shape index: {}]   ;;  %s752_s3 = inlined_call_operand.vmem [shape: f32[16,32], index: 3, kind: input, shape index: {}]   ;;  %s753_s4 = inlined_call_operand.vmem [shape: f32[16,1], index: 4, kind: input, shape index: {}]   ;;  %s754_s5 = inlined_call_operand.vmem [shape: f32[16,1], index: 5, kind: input, shape index: {}]   ;;  %s755_s6 = inlined_call_operand.<no memory space> [shape: f32[1,1], index: 6, kind: input, shape index: {}]   ;;  %s756_s7 = inlined_call_operand.hbm [shape: f32[1,1,128], index: 7, kind: output, shape index: {}]  }
   0x1   :  { %v12_v0 = vstv %s755_s6 }
   0x2   :  { %13 = vst [vmem:[#allocation2] sm:$0x1] %v12_v0 }
   0x3   :  { %v44_v1 = vld [vmem:[%s749_s0] sm:$0xff]  ;;  %v45_v2 = vld [vmem:[%s749_s0 + $0x8] sm:$0xff]  ;;  %vm80_vm0 = vcmask 64512   ;;  %v46_v3 = vld [vmem:[%s749_s0 + $0x10] sm:$0xff]  ;;  %v558_v7 = vmov 0  }
   0x4   :  { %v470_v4 = vpack.c.bf16 %v45_v2, %v44_v1  ;;  %vm614_vm1 = vmpackc.low %vm80_vm0, %vm80_vm0  ;;  %v47_v6 = vld [vmem:[%s749_s0 + $0x18] sm:$0xff]  ;;  %528 = vset.pattern.permute.xlu0 %v558_v7  ;;  %529 = vset.pattern.permute.xlu1 %v558_v7  ;;  %v29_v9 = vld [vmem:[%s750_s1] sm:$0xff] }
   0x5   :  { %v476_v8 = vpack.c.bf16 %v47_v6, %v46_v3  ;;  %v48_v10 = vld [vmem:[%s749_s0 + $0x20] sm:$0xff]  ;;  %v49_v11 = vld [vmem:[%s749_s0 + $0x28] sm:$0xff]  ;;  %453 = vmatprep.mubr.msk.f32.mxu0 %vm80_vm0, %v29_v9  ;;  %v35_v13 = vld [vmem:[%s751_s2 + $0x10] sm:$0xff] }
   0x6   :  { %472 = vmatprep.subr.msk.bf16.mxu0 %vm614_vm1, %v470_v4  ;;  %v33_v12 = vld [vmem:[%s751_s2] sm:$0xff]  ;;  %72 = vperm.xlu1 %529, %v35_v13   ;;  %v482_v14 = vpack.c.bf16 %v49_v11, %v48_v10  ;;  %v34_v15 = vld [vmem:[%s751_s2 + $0x8] sm:$0xff]  ;;  %v36_v16 = vld [vmem:[%s751_s2 + $0x18] sm:$0xff] }
   0x7   :  { %475 = vmatpush3.bf16.xpose.msk.msra.mxu0 %vm614_vm1, %v470_v4  ;;  %62 = vperm.xlu0 %528, %v33_v12  }
   0x8   :  { %478 = vmatprep.subr.msk.bf16.mxu0 %vm614_vm1, %v476_v8 }
   0x9   :  { %14 = vsyncpa [#allocation4], 0  ;;  %v39_v17 = vld [vmem:[%s753_s4] sm:$0xff]  ;;  %v50_v18 = vld [vmem:[%s749_s0 + $0x30] sm:$0xff]  ;;  %vm240_vm2 = vcmask 261120  }
   0xa   :  { %77 = vperm.xlu1 %529, %v36_v16   ;;  %v51_v19 = vld [vmem:[%s749_s0 + $0x38] sm:$0xff]  ;;  %v40_v20 = vld [vmem:[%s753_s4 + $0x8] sm:$0xff]  ;;  %v41_v22 = vld [vmem:[%s754_s5] sm:$0xff] }
   0xb   :  { %67 = vperm.xlu0 %528, %v34_v15   ;;  %v488_v21 = vpack.c.bf16 %v51_v19, %v50_v18  ;;  %v42_v23 = vld [vmem:[%s754_s5 + $0x8] sm:$0xff]  ;;  %v43_v24 = vld [vmem:[#allocation2] sm:$0x1]  ;;  %v54_v28 = vld [vmem:[%s749_s0 + $0x50] sm:$0xff] }
   0xc   :  { %v52_v25 = vld [vmem:[%s749_s0 + $0x40] sm:$0xff]  ;;  %v53_v26 = vld [vmem:[%s749_s0 + $0x48] sm:$0xff]  ;;  %v55_v29 = vld [vmem:[%s749_s0 + $0x58] sm:$0xff] }
   0xd   :  { %v494_v27 = vpack.c.bf16 %v53_v26, %v52_v25  ;;  %v500_v30 = vpack.c.bf16 %v55_v29, %v54_v28  ;;  %v56_v31 = vld [vmem:[%s749_s0 + $0x60] sm:$0xff]  ;;  %v57_v32 = vld [vmem:[%s749_s0 + $0x68] sm:$0xff]  ;;  %v58_v34 = vld [vmem:[%s749_s0 + $0x70] sm:$0xff] }
   0xe   :  { %237 = vperm.xlu1 %529, %v40_v20   ;;  %v506_v33 = vpack.c.bf16 %v57_v32, %v56_v31  ;;  %v59_v35 = vld [vmem:[%s749_s0 + $0x78] sm:$0xff]  ;;  %v30_v37 = vld [vmem:[%s750_s1 + $0x8] sm:$0xff]  ;;  %v31_v38 = vld [vmem:[%s750_s1 + $0x10] sm:$0xff] }
   0xf   :  { %481 = vmatpush3.bf16.xpose.msk.msra.mxu0 %vm614_vm1, %v476_v8  ;;  %232 = vperm.xlu0 %528, %v39_v17   ;;  %v512_v36 = vpack.c.bf16 %v59_v35, %v58_v34  ;;  %v32_v39 = vld [vmem:[%s750_s1 + $0x18] sm:$0xff]  ;;  %v37_v40 = vld [vmem:[%s752_s3] sm:$0xff]  ;;  %v38_v59 = vld [vmem:[%s752_s3 + $0x8] sm:$0xff]  ;;  %v348_v8 = vlaneseq  ;;  %s559_s3 = smov [#allocation3]  }
  0x10   :  { %484 = vmatprep.subr.msk.bf16.mxu0 %vm614_vm1, %v482_v14  ;;  %467 = vmatprep.mubr.msk.f32.mxu1 %vm240_vm2, %v37_v40  ;;  %s365_s6 = sshll.u32 %s559_s3, 4  ;;  %s366_s6 = int_to_ptr.vmem [resolvable:$true] %s365_s6 }
  0x11   :  { %v349_v11 = vshrl.u32 %v348_v8, 7  ;;  %s534_s9 = scalar_lea.vmem %s366_s6, 16  ;;  %s538_s10 = scalar_lea.vmem %s366_s6, 32 }
  0x12   :  { %331 = vperm.xlu1 %529, %v42_v23   ;;  %p535_p0 = scmp.ne.s32.totalorder %s366_s6, %s534_s9  ;;  %p539_p1 = scmp.lt.s32.totalorder %s366_s6, %s366_s6 }
  0x13   :  { %326 = vperm.xlu0 %528, %v41_v22   ;;  %p540_p2 = scmp.lt.s32.totalorder %s538_s10, %s534_s9 }
  0x15   :  { %p541_p3 = por %p540_p2, %p539_p1 }
  0x17   :  { %487 = vmatpush3.bf16.xpose.msk.msra.mxu0 %vm614_vm1, %v482_v14  ;;  %345 = vperm.xlu0 %528, %v43_v24   ;;  %v350_v14 = vsub.s32 0, %v349_v11  ;;  %p542_p4 = pnand %p541_p3, %p535_p0 }
  0x18   :  { %490 = vmatprep.subr.msk.bf16.mxu0 %vm614_vm1, %v488_v21 }
  0x1f   :  { %493 = vmatpush3.bf16.xpose.msk.msra.mxu0 %vm614_vm1, %v488_v21 }
  0x20   :  { %496 = vmatprep.subr.msk.bf16.mxu0 %vm614_vm1, %v494_v27 }
  0x27   :  { %499 = vmatpush3.bf16.xpose.msk.msra.mxu0 %vm614_vm1, %v494_v27 }
  0x28   :  { %502 = vmatprep.subr.msk.bf16.mxu0 %vm614_vm1, %v500_v30 }
  0x2f   :  { %505 = vmatpush3.bf16.xpose.msk.msra.mxu0 %vm614_vm1, %v500_v30 }
  0x30   :  { %508 = vmatprep.subr.msk.bf16.mxu0 %vm614_vm1, %v506_v33 }
  0x37   :  { %511 = vmatpush3.bf16.xpose.msk.msra.mxu0 %vm614_vm1, %v506_v33 }
  0x38   :  { %514 = vmatprep.subr.msk.bf16.mxu0 %vm614_vm1, %v512_v36 }
  0x3f   :  { %517 = vmatpush3.bf16.xpose.msk.msra.mxu0 %vm614_vm1, %v512_v36 }
  0x46   :  { %454 = vmatmul.mubr.msk.f32.vlgmr.msra.gmra.mrb[0].mxu0 %vm80_vm0, %v30_v37 }
  0x47   :  { %456 = vmatprep.mubr.msk.f32.mxu0 %vm80_vm0, %v31_v38 }
  0x4a   :  { %457 = vmatmul.mubr.msk.f32.gmra.mrb[2].mxu0 %vm80_vm0, %v32_v39 }
  0x85   :  { %v73_v42 = vpop.permute.xlu1 %72 }
  0x86   :  { %v63_v41 = vpop.permute.xlu0 %62 }
  0x89   :  { %v78_v49 = vpop.permute.xlu1 %77 }
  0x8a   :  { %v68_v43 = vpop.permute.xlu0 %67 }
  0x8d   :  { %v238_v60 = vpop.permute.xlu1 %237 }
  0x8e   :  { %v233_v61 = vpop.permute.xlu0 %232 }
  0x91   :  { %v332_v3 = vpop.permute.xlu1 %331 }
  0x92   :  { %v327_v5 = vpop.permute.xlu0 %326 }
  0x96   :  { %v346_v16 = vpop.permute.xlu0 %345 }
  0x97   :  { %v351_v18 = vrot.slane %v346_v16, %v350_v14 }
 0x119   :  { %v455_v44 = vpop.f32.mrb[0].mxu0 }
 0x11a   :  { %v213_v45 = vadd.f32 %v455_v44, %v68_v43  ;;  %v207_v46 = vpop.f32.mrb[1].mxu0 }
 0x11b   :  { %v208_v47 = vadd.f32 %v207_v46, %v63_v41 }
 0x11c   :  { %v227_v48 = vmax.f32 %v213_v45, 0.0 }
 0x11d   :  { %v226_v50 = vmax.f32 %v208_v47, 0.0  ;;  %v458_v51 = vpop.f32.mrb[2].mxu0 }
 0x11e   :  { %v223_v52 = vadd.f32 %v458_v51, %v78_v49  ;;  %v217_v53 = vpop.f32.mrb[3].mxu0 }
 0x11f   :  { %v218_v54 = vadd.f32 %v217_v53, %v73_v42  ;;  %v518_v55 = vpack.c.bf16 %v227_v48, %v226_v50 }
 0x120   :  { %v229_v56 = vmax.f32 %v223_v52, 0.0 }
 0x121   :  { %v228_v57 = vmax.f32 %v218_v54, 0.0  ;;  %519 = vmatprep.subr.bf16.mxu1 %v518_v55 }
 0x122   :  { %521 = vmatpush3.bf16.msra.mxu1 %v518_v55 }
 0x123   :  { %v522_v58 = vpack.c.bf16 %v229_v56, %v228_v57 }
 0x125   :  { %523 = vmatprep.subr.bf16.mxu1 %v522_v58 }
 0x126   :  { %525 = vmatpush3.bf16.msra.mxu1 %v522_v58 }
 0x129   :  { %468 = vmatmul.mubr.msk.f32.vlgmr.msra.gmra.mrb[0].mxu1 %vm240_vm2, %v38_v59 }
 0x1fc   :  { %v469_v62 = vpop.f32.mrb[0].mxu1 }
 0x1fd   :  { %v319_v63 = vadd.f32 %v469_v62, %v238_v60  ;;  %v313_v0 = vpop.f32.mrb[1].mxu1 }
 0x1fe   :  { %v314_v1 = vadd.f32 %v313_v0, %v233_v61 }
 0x1ff   :  { %v323_v2 = vmax.f32 %v319_v63, 0.0 }
 0x200   :  { %v322_v4 = vmax.f32 %v314_v1, 0.0 }
 0x201   :  { %v335_v6 = vmul.f32 %v332_v3, %v323_v2 }
 0x202   :  { %v334_v7 = vmul.f32 %v327_v5, %v322_v4 }
 0x204   :  { %v336_v9 = vadd.f32 %v335_v6, %v334_v7 }
 0x206   :  { %v337_v10 = vrot.slane %v336_v9, 4 }
 0x208   :  { %v338_v12 = vadd.f32 %v337_v10, %v336_v9 }
 0x20a   :  { %v339_v13 = vrot.slane %v338_v12, 2 }
 0x20c   :  { %v340_v15 = vadd.f32 %v339_v13, %v338_v12 }
 0x20e   :  { %v341_v17 = vrot.slane %v340_v15, 1 }
 0x210   :  { %v342_v19 = vadd.f32 %v341_v17, %v340_v15 }
 0x212   :  { %v352_v20 = vadd.f32 %v351_v18, %v342_v19 }
 0x214   :  { %v353_v21 = vsub.f32 0.0, %v352_v20 }
 0x216   :  { %v354_v22 = vmul.f32 1.442695, %v353_v21 }
 0x218   :  { %530 = vpow2.f32 %v354_v22 }
 0x222   :  { %v531_v23 = vpop.eup %530 }
 0x223   :  { %v356_v24 = vadd.f32 1.0, %v531_v23 }
 0x225   :  { %532 = vrcp.f32 %v356_v24 }
 0x22f   :  { %v533_v25 = vpop.eup %532 }
 0x230   :  { %358 = vst [vmem:[#allocation3] sm:$0x1] %v533_v25 }
 0x231   :  { %545 = shalt.err (!%p542_p4)
}
 0x232   :  { %s546_s12 = scalar_lea.hbm %s756_s7, 16 }
 0x233   :  { %p547_p5 = scmp.ne.s32.totalorder %s756_s7, %s546_s12  ;;  %p550_p6 = scmp.lt.u32.totalorder %s546_s12, %s756_s7 }
 0x235   :  { %p552_p7 = pnand %p550_p6, %p547_p5 }
 0x237   :  { %555 = shalt.err (!%p552_p7)
}
 0x238   :  { %368 = dma.vmem_to_hbm [thread:$0]  %s366_s6, 16, %s756_s7, [#allocation4]  }
 0x239   :  { %556 = dma.done.wait [#allocation4], 16  }
 0x23a   :  { %557 = vsyncadd [#allocation4], 4294967280 }
 0x23b   :  { %372 = vsyncpa [#allocation4], 1 }

</bundles_post_ra>
